<compile_context>
chip_gen: v7x
topology: tpu7x:2x2x1
jax: 0.10.0
libtpu: 0.0.40
codegen_flags: <defaults>
</compile_context>

<pallas_src>
import math
import jax
import jax.numpy as jnp
from jax.experimental import pallas as pl
from jax.experimental.pallas import tpu as pltpu

_LANE = 128
_MIB = 1024 * 1024


def _round_up(x, m):
    return ((x + m - 1) // m) * m


def _pick_row_tile(n_p, preferred=(1024, 512, 256, 128)):
    """Largest preferred tile dividing n_p (n_p is a multiple of 128)."""
    for t in preferred:
        if n_p % t == 0:
            return t
    return _LANE


def _pick_col_tile(f_out_p, preferred=(512, 256, 128)):
    for t in preferred:
        if f_out_p % t == 0:
            return t
    return _LANE


# ----------------------------------------------------------------------------
# Kernel 1: support = X @ W   (computed once, streamed by row/column blocks)
# ----------------------------------------------------------------------------
def _support_kernel(x_ref, w_ref, o_ref):
    o_ref[...] = jnp.dot(
        x_ref[...], w_ref[...], preferred_element_type=jnp.float32
    ).astype(o_ref.dtype)


# ----------------------------------------------------------------------------
# Kernel 2: out = adj @ support + bias
# ----------------------------------------------------------------------------
def _aggregate_kernel_inplace(adj_ref, s_ref, b_ref, o_ref):
    """f32 output: accumulate directly into the resident output block."""
    k = pl.program_id(2)

    @pl.when(k == 0)
    def _init():
        # Fold the bias in once, at reduction start.
        o_ref[...] = jnp.broadcast_to(b_ref[...].astype(o_ref.dtype), o_ref.shape)

    o_ref[...] += jnp.dot(
        adj_ref[...], s_ref[...], preferred_element_type=jnp.float32
    )


def _aggregate_kernel_scratch(adj_ref, s_ref, b_ref, o_ref, acc_ref):
    """Non-f32 output: accumulate in an f32 VMEM scratch, cast on finalize."""
    k = pl.program_id(2)

    @pl.when(k == 0)
    def _init():
        acc_ref[...] = jnp.zeros_like(acc_ref)

    acc_ref[...] += jnp.dot(
        adj_ref[...], s_ref[...], preferred_element_type=jnp.float32
    )

    @pl.when(k == pl.num_programs(2) - 1)
    def _finalize():
        o_ref[...] = (acc_ref[...] + b_ref[...].astype(jnp.float32)).astype(
            o_ref.dtype
        )


# ----------------------------------------------------------------------------
# Wrapper
# ----------------------------------------------------------------------------
def graph_convolution(x, adj, weight, bias=None, *,
                      block_m=None, block_k=None, block_n=None,
                      compute_dtype=jnp.bfloat16):
    """Fused GCN forward: adj @ (x @ weight) + bias.

    compute_dtype: dtype used for the *streamed* operands (adj, support) in the
    bandwidth-bound second matmul; accumulation is always f32.  Default bf16
    (~2x faster on the adj-HBM-bound path); pass jnp.float32 for exact
    PyTorch-equivalent numerics.
    """
    n, f_in = x.shape
    f_out = weight.shape[1]
    out_dtype = x.dtype
    stream_dtype = jnp.dtype(compute_dtype)

    for name, b in (("block_m", block_m), ("block_k", block_k), ("block_n", block_n)):
        if b is not None:
            assert b % _LANE == 0 and b > 0, f"{name} must be a positive multiple of 128"

    # ---- padded sizes / tiles ------------------------------------------------
    f_out_p = _round_up(f_out, _LANE)                    # lane-dense output
    n_p = _round_up(n, _LANE)

    tm = block_m if block_m is not None else _pick_row_tile(n_p)
    tk = block_k if block_k is not None else _pick_row_tile(n_p)
    tn = block_n if block_n is not None else min(_pick_col_tile(f_out_p), f_out_p)

    n_rows_p = _round_up(n_p, tm)                        # adj rows / output rows
    n_cols_p = _round_up(n_p, tk)                        # adj cols / support rows

    # ---- padded operands (zero padding is exact: padded rows/cols contribute 0)
    w_p = jnp.pad(weight, ((0, 0), (0, f_out_p - f_out)))
    x_p = jnp.pad(x, ((0, n_cols_p - n), (0, 0)))
    adj_p = jnp.pad(adj, ((0, n_rows_p - n), (0, n_cols_p - n))).astype(stream_dtype)
    if bias is None:
        b_p = jnp.zeros((1, f_out_p), jnp.float32)
    else:
        b_p = jnp.pad(bias.astype(jnp.float32).reshape(1, f_out),
                      ((0, 0), (0, f_out_p - f_out)))

    # ---- pass 1: support = X @ W (once), cast to streaming dtype --------------
    sup_item = stream_dtype.itemsize
    x_item = jnp.dtype(x_p.dtype).itemsize
    sup_vmem = (2 * tk * f_in * x_item          # x blocks (double-buffered)
                + 2 * f_in * tn * jnp.dtype(w_p.dtype).itemsize
                + 2 * tk * tn * sup_item)       # support output blocks
    sup_vmem_limit = int(min(max(2 * sup_vmem, 32 * _MIB), 64 * _MIB))

    support = pl.pallas_call(
        _support_kernel,
        out_shape=jax.ShapeDtypeStruct((n_cols_p, f_out_p), stream_dtype),
        grid=(n_cols_p // tk, f_out_p // tn),
        in_specs=[
            pl.BlockSpec((tk, f_in), lambda i, j: (i, 0)),       # x row-block
            pl.BlockSpec((f_in, tn), lambda i, j: (0, j)),       # weight col-block
        ],
        out_specs=pl.BlockSpec((tk, tn), lambda i, j: (i, j)),
        compiler_params=pltpu.CompilerParams(
            dimension_semantics=("parallel", "parallel"),
            vmem_limit_bytes=sup_vmem_limit,
        ),
        cost_estimate=pl.CostEstimate(
            flops=2 * n_cols_p * f_in * f_out_p,
            transcendentals=0,
            bytes_accessed=(n_cols_p * f_in * x_item
                            + f_in * f_out_p * jnp.dtype(w_p.dtype).itemsize
                            + n_cols_p * f_out_p * sup_item),
        ),
    )(x_p, w_p)

    # ---- pass 2: out = adj @ support + bias (adj-HBM-bound) -------------------
    use_scratch = jnp.dtype(out_dtype) != jnp.dtype(jnp.float32)
    adj_item = stream_dtype.itemsize
    out_item = jnp.dtype(out_dtype).itemsize

    agg_vmem = (2 * tm * tk * adj_item          # adj tiles (double-buffered)
                + 2 * tk * tn * sup_item        # support tiles
                + 2 * 1 * tn * 4                # bias
                + 2 * tm * tn * out_item        # output tiles
                + (tm * tn * 4 if use_scratch else 0))
    agg_vmem_limit = int(min(max(2 * agg_vmem, 32 * _MIB), 64 * _MIB))

    n_i, n_j, n_k = n_rows_p // tm, f_out_p // tn, n_cols_p // tk
    cost = pl.CostEstimate(
        flops=2 * n_rows_p * n_cols_p * f_out_p,
        transcendentals=0,
        bytes_accessed=(n_rows_p * n_cols_p * adj_item * n_j     # adj stream (per j-block)
                        + n_cols_p * f_out_p * sup_item * n_i    # support re-streamed per i
                        + n_rows_p * f_out_p * out_item),
    )

    kernel = _aggregate_kernel_inplace if not use_scratch else _aggregate_kernel_scratch
    scratch_shapes = [] if not use_scratch else [pltpu.VMEM((tm, tn), jnp.float32)]

    out_p = pl.pallas_call(
        kernel,
        out_shape=jax.ShapeDtypeStruct((n_rows_p, f_out_p), out_dtype),
        grid=(n_i, n_j, n_k),
        in_specs=[
            pl.BlockSpec((tm, tk), lambda i, j, k: (i, k)),      # adj tile (streamed)
            pl.BlockSpec((tk, tn), lambda i, j, k: (k, j)),      # support tile
            pl.BlockSpec((1, tn), lambda i, j, k: (0, j)),       # bias
        ],
        out_specs=pl.BlockSpec((tm, tn), lambda i, j, k: (i, j)),
        scratch_shapes=scratch_shapes,
        compiler_params=pltpu.CompilerParams(
            dimension_semantics=("parallel", "parallel", "arbitrary"),
            vmem_limit_bytes=agg_vmem_limit,
        ),
        cost_estimate=cost,
    )(adj_p, support, b_p)

    return out_p[:n, :f_out]


if __name__ == "__main__":
    # Small problem: N=256 nodes, in_features=64, out_features=32
    N, F_IN, F_OUT = 256, 64, 32

    key = jax.random.PRNGKey(0)
    kx, kadj, kw, kb = jax.random.split(key, 4)

    # Node features
    x = jax.random.normal(kx, (N, F_IN), dtype=jnp.float32)

    # Symmetric, row-normalized dense adjacency (stand-in for a sparse adj)
    a_raw = (jax.random.uniform(kadj, (N, N)) > 0.9).astype(jnp.float32)
    a_sym = jnp.maximum(a_raw, a_raw.T) + jnp.eye(N, dtype=jnp.float32)
    adj = a_sym / jnp.sum(a_sym, axis=1, keepdims=True)

    # Parameters, init as in reset_parameters(): uniform(-stdv, stdv),
    # stdv = 1/sqrt(out_features)
    stdv = 1.0 / math.sqrt(F_OUT)
    weight = jax.random.uniform(kw, (F_IN, F_OUT), minval=-stdv, maxval=stdv,
                                dtype=jnp.float32)
    bias = jax.random.uniform(kb, (F_OUT,), minval=-stdv, maxval=stdv,
                              dtype=jnp.float32)

    # Reference in plain JAX
    ref = adj @ (x @ weight) + bias

    # Default path: bf16-streamed adj/support, f32 accumulation (bandwidth win)
    out_bf16 = graph_convolution(x, adj, weight, bias)
    out_bf16 = jax.block_until_ready(out_bf16)
    assert out_bf16.shape == (N, F_OUT)
    assert jnp.allclose(out_bf16, ref, atol=5e-2, rtol=5e-2)

    # Exact f32 path (precise semantics of the PyTorch module)
    out_f32 = graph_convolution(x, adj, weight, bias, compute_dtype=jnp.float32)
    out_f32 = jax.block_until_ready(out_f32)
    assert out_f32.shape == (N, F_OUT)
    assert jnp.allclose(out_f32, ref, atol=1e-3, rtol=1e-3)

    # Non-divisible N + user block sizes: exercise the padding path
    Nq = 200
    xq, adjq = x[:Nq], adj[:Nq, :Nq]
    refq = adjq @ (xq @ weight) + bias
    outq = graph_convolution(xq, adjq, weight, bias,
                             block_m=128, block_k=128,
                             compute_dtype=jnp.float32)
    outq = jax.block_until_ready(outq)
    assert outq.shape == (Nq, F_OUT)
    assert jnp.allclose(outq, refq, atol=1e-3, rtol=1e-3)

    print("KERNEL_OK")
</pallas_src>

<mosaic_0001>
module attributes {stable_mosaic.version = 11 : i64} {
  func.func @_support_kernel(%arg0: i32, %arg1: i32, %arg2: memref<256x64xf32, #tpu.memory_space<vmem>>, %arg3: memref<64x128xf32, #tpu.memory_space<vmem>>, %arg4: memref<256x128xbf16, #tpu.memory_space<vmem>>) attributes {dimension_semantics = [#tpu.dimension_semantics<parallel>, #tpu.dimension_semantics<parallel>], iteration_bounds = array<i64: 1, 1>, scalar_prefetch = 0 : i64, scratch_operands = 0 : i64, tpu.core_type = #tpu.core_type<tc>, window_params = [{transform_indices = @transform_0, window_bounds = array<i64: 256, 64>}, {transform_indices = @transform_1, window_bounds = array<i64: 64, 128>}, {transform_indices = @transform_2, window_bounds = array<i64: 256, 128>}]} {
    %c0 = arith.constant 0 : index
    %c0_0 = arith.constant 0 : index
    %0 = vector.load %arg2[%c0, %c0_0] : memref<256x64xf32, #tpu.memory_space<vmem>>, vector<256x64xf32>
    %c0_1 = arith.constant 0 : index
    %c0_2 = arith.constant 0 : index
    %1 = vector.load %arg3[%c0_1, %c0_2] : memref<64x128xf32, #tpu.memory_space<vmem>>, vector<64x128xf32>
    %cst = arith.constant dense<0.000000e+00> : vector<256x128xf32>
    %2 = tpu.matmul %0, %1, %cst {dimension_numbers = #tpu.dot_dimension_numbers<[1], [0], [0], [1], [0, 0, 1, 1], [], []>} : vector<256x64xf32>, vector<64x128xf32>, vector<256x128xf32> -> vector<256x128xf32>
    %3 = arith.truncf %2 : vector<256x128xf32> to vector<256x128xbf16>
    %c0_3 = arith.constant 0 : index
    %c0_4 = arith.constant 0 : index
    %4 = vector.load %arg4[%c0_3, %c0_4] : memref<256x128xbf16, #tpu.memory_space<vmem>>, vector<256x128xbf16>
    tpu.vector_store %arg4[%c0_3, %c0_4], %3 {strides = array<i32>} : memref<256x128xbf16, #tpu.memory_space<vmem>>, vector<256x128xbf16>,
    return
  }
  func.func @transform_0(%arg0: i32, %arg1: i32) -> (i32, i32) {
    %c0_i32 = arith.constant 0 : i32
    %c0_i32_0 = arith.constant 0 : i32
    return %arg0, %c0_i32 : i32, i32
  }
  func.func @transform_1(%arg0: i32, %arg1: i32) -> (i32, i32) {
    %c0_i32 = arith.constant 0 : i32
    %c0_i32_0 = arith.constant 0 : i32
    return %c0_i32, %arg1 : i32, i32
  }
  func.func @transform_2(%arg0: i32, %arg1: i32) -> (i32, i32) {
    %c0_i32 = arith.constant 0 : i32
    return %arg0, %arg1 : i32, i32
  }
}

</mosaic_0001>

<bundles_post_ra>
// kernel: tpu_custom_call.1
= control target key start
LH: loop header
LB: loop body
LE: loop exit
PB: predicated region body
PF: predicated region fallthrough
CT: control target
= control target key end

     0   :  { %vm52_vm0 = vcmask 523264   ;;  %s1078_s0 = inlined_call_operand.vmem [shape: f32[256,64], index: 0, kind: input, shape index: {}]   ;;  %s1079_s1 = inlined_call_operand.vmem [shape: f32[64,128], index: 1, kind: input, shape index: {}]   ;;  %s1080_s2 = inlined_call_operand.hbm [shape: bf16[256,128], index: 2, kind: output, shape index: {}]  }
   0x1   :  { %v44_v0 = vld [vmem:[%s1079_s1] sm:$0xff]  ;;  %v45_v1 = vld [vmem:[%s1079_s1 + $0x8] sm:$0xff]  ;;  %v46_v2 = vld [vmem:[%s1079_s1 + $0x10] sm:$0xff] }
   0x2   :  { %v845_v3 = vpack.c.bf16 %v45_v1, %v44_v0  ;;  %v47_v4 = vld [vmem:[%s1079_s1 + $0x18] sm:$0xff]  ;;  %v48_v6 = vld [vmem:[%s1079_s1 + $0x20] sm:$0xff]  ;;  %v49_v7 = vld [vmem:[%s1079_s1 + $0x28] sm:$0xff] }
   0x3   :  { %v849_v5 = vpack.c.bf16 %v47_v4, %v46_v2  ;;  %v12_v8 = vld [vmem:[%s1078_s0] sm:$0xff]  ;;  %v853_v10 = vpack.c.bf16 %v49_v7, %v48_v6  ;;  %v50_v11 = vld [vmem:[%s1079_s1 + $0x30] sm:$0xff]  ;;  %v51_v12 = vld [vmem:[%s1079_s1 + $0x38] sm:$0xff] }
   0x4   :  { %846 = vmatprep.subr.bf16.mxu0 %v845_v3  ;;  %861 = vmatprep.subr.bf16.mxu1 %v845_v3  ;;  %v28_v9 = vld [vmem:[%s1078_s0 + $0x80] sm:$0xff]  ;;  %v857_v13 = vpack.c.bf16 %v51_v12, %v50_v11 }
   0x5   :  { %848 = vmatpush3.bf16.msra.mxu0 %v845_v3  ;;  %865 = vmatpush3.bf16.msra.mxu1 %v845_v3 }
   0x6   :  { %850 = vmatprep.subr.bf16.mxu0 %v849_v5  ;;  %862 = vmatprep.subr.bf16.mxu1 %v849_v5 }
   0x7   :  { %797 = vmatprep.mubr.msk.f32.mxu0 %vm52_vm0, %v12_v8  ;;  %821 = vmatprep.mubr.msk.f32.mxu1 %vm52_vm0, %v28_v9 }
   0x9   :  { %852 = vmatpush3.bf16.msra.mxu0 %v849_v5  ;;  %866 = vmatpush3.bf16.msra.mxu1 %v849_v5 }
   0xa   :  { %854 = vmatprep.subr.bf16.mxu0 %v853_v10  ;;  %863 = vmatprep.subr.bf16.mxu1 %v853_v10 }
   0xd   :  { %856 = vmatpush3.bf16.msra.mxu0 %v853_v10  ;;  %867 = vmatpush3.bf16.msra.mxu1 %v853_v10 }
   0xe   :  { %858 = vmatprep.subr.bf16.mxu0 %v857_v13  ;;  %864 = vmatprep.subr.bf16.mxu1 %v857_v13 }
   0xf   :  { %7 = vsyncpa [#allocation3], 0  ;;  %v13_v14 = vld [vmem:[%s1078_s0 + $0x8] sm:$0xff]  ;;  %v14_v16 = vld [vmem:[%s1078_s0 + $0x10] sm:$0xff] }
  0x10   :  { %v29_v15 = vld [vmem:[%s1078_s0 + $0x88] sm:$0xff]  ;;  %v30_v17 = vld [vmem:[%s1078_s0 + $0x90] sm:$0xff]  ;;  %v15_v18 = vld [vmem:[%s1078_s0 + $0x18] sm:$0xff] }
  0x11   :  { %860 = vmatpush3.bf16.msra.mxu0 %v857_v13  ;;  %868 = vmatpush3.bf16.msra.mxu1 %v857_v13  ;;  %v31_v19 = vld [vmem:[%s1078_s0 + $0x98] sm:$0xff]  ;;  %v16_v20 = vld [vmem:[%s1078_s0 + $0x20] sm:$0xff]  ;;  %v17_v22 = vld [vmem:[%s1078_s0 + $0x28] sm:$0xff] }
  0x12   :  { %v32_v21 = vld [vmem:[%s1078_s0 + $0xa0] sm:$0xff]  ;;  %v33_v23 = vld [vmem:[%s1078_s0 + $0xa8] sm:$0xff]  ;;  %v18_v24 = vld [vmem:[%s1078_s0 + $0x30] sm:$0xff] }
  0x13   :  { %v34_v25 = vld [vmem:[%s1078_s0 + $0xb0] sm:$0xff]  ;;  %v19_v26 = vld [vmem:[%s1078_s0 + $0x38] sm:$0xff]  ;;  %v20_v28 = vld [vmem:[%s1078_s0 + $0x40] sm:$0xff] }
  0x14   :  { %798 = vmatmul.mubr.msk.f32.vlgmr.msra.gmra.mrb[0].mxu0 %vm52_vm0, %v13_v14  ;;  %822 = vmatmul.mubr.msk.f32.vlgmr.msra.gmra.mrb[0].mxu1 %vm52_vm0, %v29_v15  ;;  %v35_v27 = vld [vmem:[%s1078_s0 + $0xb8] sm:$0xff]  ;;  %v36_v29 = vld [vmem:[%s1078_s0 + $0xc0] sm:$0xff]  ;;  %v21_v30 = vld [vmem:[%s1078_s0 + $0x48] sm:$0xff] }
  0x15   :  { %800 = vmatprep.mubr.msk.f32.mxu0 %vm52_vm0, %v14_v16  ;;  %824 = vmatprep.mubr.msk.f32.mxu1 %vm52_vm0, %v30_v17  ;;  %v37_v31 = vld [vmem:[%s1078_s0 + $0xc8] sm:$0xff]  ;;  %v22_v32 = vld [vmem:[%s1078_s0 + $0x50] sm:$0xff]  ;;  %v23_v34 = vld [vmem:[%s1078_s0 + $0x58] sm:$0xff] }
  0x16   :  { %v38_v33 = vld [vmem:[%s1078_s0 + $0xd0] sm:$0xff]  ;;  %v39_v35 = vld [vmem:[%s1078_s0 + $0xd8] sm:$0xff]  ;;  %v24_v36 = vld [vmem:[%s1078_s0 + $0x60] sm:$0xff] }
  0x17   :  { %v40_v37 = vld [vmem:[%s1078_s0 + $0xe0] sm:$0xff]  ;;  %v25_v38 = vld [vmem:[%s1078_s0 + $0x68] sm:$0xff]  ;;  %v26_v40 = vld [vmem:[%s1078_s0 + $0x70] sm:$0xff] }
  0x18   :  { %801 = vmatmul.mubr.msk.f32.gmra.mrb[2].mxu0 %vm52_vm0, %v15_v18  ;;  %825 = vmatmul.mubr.msk.f32.gmra.mrb[2].mxu1 %vm52_vm0, %v31_v19  ;;  %v41_v39 = vld [vmem:[%s1078_s0 + $0xe8] sm:$0xff]  ;;  %v42_v41 = vld [vmem:[%s1078_s0 + $0xf0] sm:$0xff]  ;;  %v27_v42 = vld [vmem:[%s1078_s0 + $0x78] sm:$0xff] }
  0x19   :  { %803 = vmatprep.mubr.msk.f32.mxu0 %vm52_vm0, %v16_v20  ;;  %827 = vmatprep.mubr.msk.f32.mxu1 %vm52_vm0, %v32_v21  ;;  %v43_v43 = vld [vmem:[%s1078_s0 + $0xf8] sm:$0xff]  ;;  %s896_s0 = smov [#allocation2]  }
  0x1a   :  { %s539_s1 = sshll.u32 %s896_s0, 4  ;;  %s540_s1 = int_to_ptr.vmem [resolvable:$true] %s539_s1 }
  0x1b   :  { %s872_s3 = scalar_lea.vmem %s540_s1, 2048  ;;  %p877_p1 = scmp.lt.s32.totalorder %s540_s1, %s540_s1 }
  0x1c   :  { %804 = vmatmul.mubr.msk.f32.gmra.mrb[4].mxu0 %vm52_vm0, %v17_v22  ;;  %828 = vmatmul.mubr.msk.f32.gmra.mrb[4].mxu1 %vm52_vm0, %v33_v23  ;;  %p873_p0 = scmp.ne.s32.totalorder %s540_s1, %s872_s3  ;;  %p878_p2 = scmp.lt.s32.totalorder %s872_s3, %s872_s3 }
  0x1d   :  { %806 = vmatprep.mubr.msk.f32.mxu0 %vm52_vm0, %v18_v24  ;;  %830 = vmatprep.mubr.msk.f32.mxu1 %vm52_vm0, %v34_v25 }
  0x1e   :  { %p879_p3 = por %p878_p2, %p877_p1 }
  0x20   :  { %807 = vmatmul.mubr.msk.f32.gmra.mrb[6].mxu0 %vm52_vm0, %v19_v26  ;;  %831 = vmatmul.mubr.msk.f32.gmra.mrb[6].mxu1 %vm52_vm0, %v35_v27  ;;  %p880_p4 = pnand %p879_p3, %p873_p0 }
  0x21   :  { %809 = vmatprep.mubr.msk.f32.mxu0 %vm52_vm0, %v20_v28  ;;  %833 = vmatprep.mubr.msk.f32.mxu1 %vm52_vm0, %v36_v29 }
  0x24   :  { %810 = vmatmul.mubr.msk.f32.gmra.mrb[8].mxu0 %vm52_vm0, %v21_v30  ;;  %834 = vmatmul.mubr.msk.f32.gmra.mrb[8].mxu1 %vm52_vm0, %v37_v31 }
  0x25   :  { %812 = vmatprep.mubr.msk.f32.mxu0 %vm52_vm0, %v22_v32  ;;  %836 = vmatprep.mubr.msk.f32.mxu1 %vm52_vm0, %v38_v33 }
  0x28   :  { %813 = vmatmul.mubr.msk.f32.gmra.mrb[10].mxu0 %vm52_vm0, %v23_v34  ;;  %837 = vmatmul.mubr.msk.f32.gmra.mrb[10].mxu1 %vm52_vm0, %v39_v35 }
  0x29   :  { %815 = vmatprep.mubr.msk.f32.mxu0 %vm52_vm0, %v24_v36  ;;  %839 = vmatprep.mubr.msk.f32.mxu1 %vm52_vm0, %v40_v37 }
  0x2c   :  { %816 = vmatmul.mubr.msk.f32.gmra.mrb[12].mxu0 %vm52_vm0, %v25_v38  ;;  %840 = vmatmul.mubr.msk.f32.gmra.mrb[12].mxu1 %vm52_vm0, %v41_v39 }
  0x2d   :  { %818 = vmatprep.mubr.msk.f32.mxu0 %vm52_vm0, %v26_v40  ;;  %842 = vmatprep.mubr.msk.f32.mxu1 %vm52_vm0, %v42_v41 }
  0x30   :  { %819 = vmatmul.mubr.msk.f32.gmra.mrb[14].mxu0 %vm52_vm0, %v27_v42  ;;  %843 = vmatmul.mubr.msk.f32.gmra.mrb[14].mxu1 %vm52_vm0, %v43_v43 }
  0xe7   :  { %v799_v44 = vpop.f32.mrb[0].mxu0  ;;  %v823_v45 = vpop.f32.mrb[0].mxu1 }
  0xe8   :  { %v215_v46 = vpop.f32.mrb[1].mxu0  ;;  %v295_v47 = vpop.f32.mrb[1].mxu1 }
  0xe9   :  { %v649_v48 = vpack.c.bf16 %v799_v44, %v215_v46  ;;  %v689_v49 = vpack.c.bf16 %v823_v45, %v295_v47 }
  0xeb   :  { %650 = vst [vmem:[#allocation2] sm:$0xff] %v649_v48   ;;  %733 = vst [vmem:[#allocation2 + $0x40] sm:$0xff] %v689_v49   ;;  %v802_v50 = vpop.f32.mrb[2].mxu0  ;;  %v826_v51 = vpop.f32.mrb[2].mxu1 }
  0xec   :  { %v225_v52 = vpop.f32.mrb[3].mxu0  ;;  %v305_v53 = vpop.f32.mrb[3].mxu1 }
  0xed   :  { %v654_v54 = vpack.c.bf16 %v802_v50, %v225_v52  ;;  %v694_v55 = vpack.c.bf16 %v826_v51, %v305_v53 }
  0xef   :  { %726 = vst [vmem:[#allocation2 + $0x8] sm:$0xff] %v654_v54   ;;  %734 = vst [vmem:[#allocation2 + $0x48] sm:$0xff] %v694_v55   ;;  %v805_v56 = vpop.f32.mrb[4].mxu0  ;;  %v829_v57 = vpop.f32.mrb[4].mxu1 }
  0xf0   :  { %v235_v58 = vpop.f32.mrb[5].mxu0  ;;  %v315_v59 = vpop.f32.mrb[5].mxu1 }
  0xf1   :  { %v659_v60 = vpack.c.bf16 %v805_v56, %v235_v58  ;;  %v699_v61 = vpack.c.bf16 %v829_v57, %v315_v59 }
  0xf3   :  { %727 = vst [vmem:[#allocation2 + $0x10] sm:$0xff] %v659_v60   ;;  %735 = vst [vmem:[#allocation2 + $0x50] sm:$0xff] %v699_v61   ;;  %v808_v62 = vpop.f32.mrb[6].mxu0  ;;  %v832_v63 = vpop.f32.mrb[6].mxu1 }
  0xf4   :  { %v245_v0 = vpop.f32.mrb[7].mxu0  ;;  %v325_v1 = vpop.f32.mrb[7].mxu1 }
  0xf5   :  { %v664_v2 = vpack.c.bf16 %v808_v62, %v245_v0  ;;  %v704_v3 = vpack.c.bf16 %v832_v63, %v325_v1 }
  0xf7   :  { %728 = vst [vmem:[#allocation2 + $0x18] sm:$0xff] %v664_v2   ;;  %736 = vst [vmem:[#allocation2 + $0x58] sm:$0xff] %v704_v3   ;;  %v811_v4 = vpop.f32.mrb[8].mxu0  ;;  %v835_v5 = vpop.f32.mrb[8].mxu1 }
  0xf8   :  { %v255_v6 = vpop.f32.mrb[9].mxu0  ;;  %v335_v7 = vpop.f32.mrb[9].mxu1 }
  0xf9   :  { %v669_v8 = vpack.c.bf16 %v811_v4, %v255_v6  ;;  %v709_v9 = vpack.c.bf16 %v835_v5, %v335_v7 }
  0xfb   :  { %729 = vst [vmem:[#allocation2 + $0x20] sm:$0xff] %v669_v8   ;;  %737 = vst [vmem:[#allocation2 + $0x60] sm:$0xff] %v709_v9   ;;  %v814_v10 = vpop.f32.mrb[10].mxu0  ;;  %v838_v11 = vpop.f32.mrb[10].mxu1 }
  0xfc   :  { %v265_v12 = vpop.f32.mrb[11].mxu0  ;;  %v345_v13 = vpop.f32.mrb[11].mxu1 }
  0xfd   :  { %v674_v14 = vpack.c.bf16 %v814_v10, %v265_v12  ;;  %v714_v15 = vpack.c.bf16 %v838_v11, %v345_v13 }
  0xff   :  { %730 = vst [vmem:[#allocation2 + $0x28] sm:$0xff] %v674_v14   ;;  %738 = vst [vmem:[#allocation2 + $0x68] sm:$0xff] %v714_v15   ;;  %v817_v16 = vpop.f32.mrb[12].mxu0  ;;  %v841_v17 = vpop.f32.mrb[12].mxu1 }
 0x100   :  { %v275_v18 = vpop.f32.mrb[13].mxu0  ;;  %v355_v19 = vpop.f32.mrb[13].mxu1 }
 0x101   :  { %v679_v20 = vpack.c.bf16 %v817_v16, %v275_v18  ;;  %v719_v21 = vpack.c.bf16 %v841_v17, %v355_v19 }
 0x103   :  { %731 = vst [vmem:[#allocation2 + $0x30] sm:$0xff] %v679_v20   ;;  %739 = vst [vmem:[#allocation2 + $0x70] sm:$0xff] %v719_v21   ;;  %v820_v22 = vpop.f32.mrb[14].mxu0  ;;  %v844_v23 = vpop.f32.mrb[14].mxu1 }
 0x104   :  { %v285_v24 = vpop.f32.mrb[15].mxu0  ;;  %v365_v25 = vpop.f32.mrb[15].mxu1 }
 0x105   :  { %v684_v26 = vpack.c.bf16 %v820_v22, %v285_v24  ;;  %v724_v27 = vpack.c.bf16 %v844_v23, %v365_v25 }
 0x107   :  { %732 = vst [vmem:[#allocation2 + $0x38] sm:$0xff] %v684_v26   ;;  %740 = vst [vmem:[#allocation2 + $0x78] sm:$0xff] %v724_v27  }
 0x108   :  { %883 = shalt.err (!%p880_p4)
}
 0x109   :  { %s884_s6 = scalar_lea.hbm %s1080_s2, 2048 }
 0x10a   :  { %p885_p5 = scmp.ne.s32.totalorder %s1080_s2, %s884_s6  ;;  %p888_p6 = scmp.lt.u32.totalorder %s884_s6, %s1080_s2 }
 0x10c   :  { %p890_p7 = pnand %p888_p6, %p885_p5 }
 0x10e   :  { %893 = shalt.err (!%p890_p7)
}
 0x10f   :  { %s897_s11 = smov 64   ;;  %s898_s12 = smov 4  }
 0x110   :  { %545 = dma.vmem_to_hbm [thread:$0]  %s540_s1, 2048, %s1080_s2, [#allocation3], %s897_s11, %s897_s11, %s898_s12  }
 0x111   :  { %894 = dma.done.wait [#allocation3], 2048  }
 0x112   :  { %895 = vsyncadd [#allocation3], 4294965248 }
 0x113   :  { %549 = vsyncpa [#allocation3], 1 }

</bundles_post_ra>
